<compile_context>
chip_gen: v7x
topology: tpu7x:2x2x1
jax: 0.10.0
libtpu: 0.0.40
codegen_flags: <defaults>
</compile_context>

<pallas_src>
import math
import numpy as np
import jax
import jax.numpy as jnp
from jax.experimental import pallas as pl
from jax.experimental.pallas import tpu as pltpu


# ---------------------------------------------------------------------------
# Pallas kernel: fused  out = (GELU(x @ W1 + b1)) @ W2 + b2, tiled over (N, K)
# Matches torch.nn.Sequential(Linear, nn.GELU() [exact erf], Linear)
# ---------------------------------------------------------------------------
def _mlp_proj_kernel(x_ref, w1_ref, b1_ref, w2_ref, b2_ref, o_ref, acc_ref):
    k = pl.program_id(1)
    nk = pl.num_programs(1)

    @pl.when(k == 0)
    def _init():
        acc_ref[...] = jnp.zeros_like(acc_ref)

    # ---- first layer slice: h_k = GELU(x @ W1[:, k_slice] + b1[k_slice]) -----
    x = x_ref[...].astype(jnp.bfloat16)                       # (B, E) bf16 for MXU
    h = jnp.dot(x, w1_ref[...], preferred_element_type=jnp.float32)   # (B, tk) f32 acc
    h = h + b1_ref[...]                                       # (1, tk) f32 broadcast
    # exact GELU (erf form) -- same as torch.nn.GELU(approximate='none'), kept f32
    inv_sqrt2 = jnp.float32(0.7071067811865476)
    h = 0.5 * h * (1.0 + jax.lax.erf(h * inv_sqrt2))

    # ---- second layer partial: acc += h_k @ W2[k_slice, n_slice] -------------
    acc_ref[...] += jnp.dot(h.astype(jnp.bfloat16), w2_ref[...],
                            preferred_element_type=jnp.float32)

    @pl.when(k == nk - 1)
    def _finalize():
        o_ref[...] = (acc_ref[...] + b2_ref[...]).astype(o_ref.dtype)


def _pick_tile(d: int, cap: int) -> int:
    """Largest tile <= cap that evenly divides d, preferring lane-dense multiples of 128."""
    if d <= cap:
        return d
    t = (cap // 128) * 128
    while t >= 128:
        if d % t == 0:
            return t
        t -= 128
    return d


def enc_to_dec_proj_pallas(x, w1, b1, w2, b2, *, tile_n=None, tile_k=None):
    """Fused MLP align module. x: (B, E) f32 -> (B, D2) f32.

    w1: (E, D1) bf16, w2: (D1, D2) bf16, b1: (D1,) f32, b2: (D2,) f32.
    """
    B, E = x.shape
    D1 = w1.shape[1]
    D2 = w2.shape[1]
    assert w2.shape[0] == D1 and b1.shape[-1] == D1 and b2.shape[-1] == D2

    # Pad batch to a multiple of 8 so tiles fill vreg sublanes (MXU M dim is ~free).
    b_pad = max(8, ((B + 7) // 8) * 8)
    if b_pad != B:
        x = jnp.pad(x, ((0, b_pad - B), (0, 0)))

    # Tile sizes: sized so weight tiles double-buffer comfortably inside v7x's 64 MiB
    # VMEM (e.g. D=4096 -> tk=512, tn=1024 in bf16 ~ a few MiB per step).
    tn = tile_n if tile_n is not None else _pick_tile(D2, 1024)
    tk = tile_k if tile_k is not None else _pick_tile(D1, 512)
    assert D2 % tn == 0 and D1 % tk == 0

    b1_2d = b1.reshape(1, D1).astype(jnp.float32)
    b2_2d = b2.reshape(1, D2).astype(jnp.float32)

    grid = (D2 // tn, D1 // tk)   # (parallel N axis, reduction K axis last)

    out = pl.pallas_call(
        _mlp_proj_kernel,
        out_shape=jax.ShapeDtypeStruct((b_pad, D2), x.dtype),
        grid=grid,
        in_specs=[
            pl.BlockSpec((b_pad, E), lambda j, k: (0, 0)),   # x (resident)
            pl.BlockSpec((E, tk),    lambda j, k: (0, k)),   # W1 column slice
            pl.BlockSpec((1, tk),    lambda j, k: (0, k)),   # b1 slice
            pl.BlockSpec((tk, tn),   lambda j, k: (k, j)),   # W2 tile
            pl.BlockSpec((1, tn),    lambda j, k: (0, j)),   # b2 slice
        ],
        out_specs=pl.BlockSpec((b_pad, tn), lambda j, k: (0, j)),
        scratch_shapes=[pltpu.VMEM((b_pad, tn), jnp.float32)],   # f32 accumulator
        compiler_params=pltpu.CompilerParams(
            dimension_semantics=("parallel", "arbitrary"),
            vmem_limit_bytes=32 * 1024 * 1024,
        ),
    )(x, w1, b1_2d, w2, b2_2d)

    return out[:B]


# ---------------------------------------------------------------------------
# CLAP2LLAMA forward-pass reproduction (kernel = align MLP, rest = JAX glue)
# ---------------------------------------------------------------------------
class CLAP2LLAMAPallas:
    PAD_TOKEN_ID = 0  # synthetic tokenizer pad id

    def __init__(self, enc_hidden, dec_hidden, vocab_size, key, tile_n=None, tile_k=None):
        k1, k2, k3, k4, k5 = jax.random.split(key, 5)
        # enc_to_dec_proj parameters (torch-Linear-like init scale); weights stored bf16
        # (streamed to the MXU directly), biases stay f32.
        s1 = 1.0 / math.sqrt(enc_hidden)
        s2 = 1.0 / math.sqrt(dec_hidden)
        self.w1 = jax.random.uniform(k1, (enc_hidden, dec_hidden), jnp.float32, -s1, s1
                                     ).astype(jnp.bfloat16)
        self.b1 = jax.random.uniform(k2, (dec_hidden,), jnp.float32, -s1, s1)
        self.w2 = jax.random.uniform(k3, (dec_hidden, dec_hidden), jnp.float32, -s2, s2
                                     ).astype(jnp.bfloat16)
        self.b2 = jax.random.uniform(k4, (dec_hidden,), jnp.float32, -s2, s2)
        # synthetic decoder input-embedding table (get_decoder_embeddings())
        self.embed_table = jax.random.normal(k5, (vocab_size, dec_hidden), jnp.float32) * 0.02
        self.tile_n = tile_n
        self.tile_k = tile_k

    # forward_encoder: CLAPAudioTower is a frozen pretrained model
    # TODO(synk): CLAPAudioTower (HTSAT audio transformer) has no in-script Pallas
    #             equivalent; its pooled last_hidden_state is taken as the kernel input.
    def forward_encoder(self, audio_embed):
        return audio_embed  # (B, E)

    # forward_align == forward_mlp : the Pallas hot path
    # TODO(synk): at serving time the bf16 W1/W2 could be kept VMEM-resident across
    #             calls (cross-pallas_call prefetch) instead of re-streamed per call.
    def forward_align(self, x):
        return enc_to_dec_proj_pallas(x, self.w1, self.b1, self.w2, self.b2,
                                      tile_n=self.tile_n, tile_k=self.tile_k)

    def shift_tokenized_input(self, input_ids, attn_mask, audio_token_length):
        B, S = input_ids.shape
        shifted_input_ids = jnp.full((B, S + audio_token_length), -100, dtype=jnp.int32)
        shifted_input_ids = shifted_input_ids.at[:, audio_token_length:].set(input_ids)
        pad_mask = shifted_input_ids == self.PAD_TOKEN_ID
        shifted_input_ids = jnp.where(pad_mask, -100, shifted_input_ids)
        shifted_attn_mask = jnp.ones((B, S + audio_token_length), dtype=jnp.int32)
        shifted_attn_mask = shifted_attn_mask.at[:, audio_token_length:].set(attn_mask)
        return shifted_input_ids, shifted_attn_mask

    def forward_decoder(self, proj_audio_embed, input_ids, attn_mask):
        token_embeddings = self.embed_table[input_ids]                 # (B, S, D)
        proj_audio_embed = proj_audio_embed[:, None, :]                # (B, 1, D)
        input_embeds = jnp.concatenate((proj_audio_embed, token_embeddings), axis=1)
        shifted_input_ids, shifted_attn_mask = self.shift_tokenized_input(
            input_ids, attn_mask, proj_audio_embed.shape[1]
        )
        # TODO(synk): LlamaForCausalLM (vicuna-7b) decoder + its CE loss is a frozen
        #             pretrained model; returning the assembled decoder inputs instead.
        return {
            "inputs_embeds": input_embeds,
            "labels": shifted_input_ids,
            "attention_mask": shifted_attn_mask,
            "loss": None,
        }

    def forward(self, audio_embed, input_ids, attn_mask):
        enc_out = self.forward_encoder(audio_embed)
        proj_audio_embed = self.forward_align(enc_out)
        out = self.forward_decoder(proj_audio_embed, input_ids, attn_mask)
        out["proj_audio_embed"] = proj_audio_embed
        return out


# ---------------------------------------------------------------------------
# reference (pure JAX) mimicking the kernel's numerics (bf16 weights, f32 acc)
# ---------------------------------------------------------------------------
def _mlp_ref(x, w1_bf16, b1, w2_bf16, b2):
    xb = x.astype(jnp.bfloat16).astype(jnp.float32)
    w1 = w1_bf16.astype(jnp.float32)
    w2 = w2_bf16.astype(jnp.float32)
    h = xb @ w1 + b1
    h = 0.5 * h * (1.0 + jax.lax.erf(h * jnp.float32(0.7071067811865476)))
    hb = h.astype(jnp.bfloat16).astype(jnp.float32)
    return hb @ w2 + b2


if __name__ == "__main__":
    B = 2           # batch
    E = 64          # encoder hidden size (CLAP hidden_size, scaled down)
    D = 256         # decoder hidden size (LLaMA hidden_size, scaled down)
    S = 8           # caption sequence length
    VOCAB = 64      # synthetic tokenizer vocab

    key = jax.random.PRNGKey(0)
    k_model, k_audio, k_ids = jax.random.split(key, 3)

    # tile_n = tile_k = 128 -> grid (2, 2): exercises the parallel-N / reduction-K
    # tiling and the f32 accumulator path even at toy sizes.
    model = CLAP2LLAMAPallas(E, D, VOCAB, k_model, tile_n=128, tile_k=128)

    audio_embed = jax.random.normal(k_audio, (B, E), jnp.float32)        # encoder output stand-in
    input_ids = jax.random.randint(k_ids, (B, S), 1, VOCAB, dtype=jnp.int32)  # caption tokens
    input_ids = input_ids.at[:, -1].set(CLAP2LLAMAPallas.PAD_TOKEN_ID)   # include a pad token
    attn_mask = jnp.ones((B, S), jnp.int32).at[:, -1].set(0)

    out = model.forward(audio_embed, input_ids, attn_mask)
    jax.block_until_ready(out["proj_audio_embed"])
    jax.block_until_ready(out["inputs_embeds"])

    ref = _mlp_ref(audio_embed, model.w1, model.b1, model.w2, model.b2)
    np.testing.assert_allclose(
        np.asarray(out["proj_audio_embed"], dtype=np.float32), np.asarray(ref),
        rtol=1e-4, atol=1e-4,
    )

    # also validate the auto-tile (single-block) path
    single = enc_to_dec_proj_pallas(audio_embed, model.w1, model.b1, model.w2, model.b2)
    jax.block_until_ready(single)
    np.testing.assert_allclose(
        np.asarray(single, dtype=np.float32), np.asarray(ref), rtol=1e-4, atol=1e-4
    )

    assert out["inputs_embeds"].shape == (B, 1 + S, D)
    assert out["labels"].shape == (B, 1 + S)
    assert int(out["labels"][0, 0]) == -100
    assert int(out["labels"][0, -1]) == -100  # pad masked to -100

    print("KERNEL_OK")
</pallas_src>

<mosaic_0001>
module attributes {stable_mosaic.version = 11 : i64} {
  func.func @_mlp_proj_kernel(%arg0: i32, %arg1: i32, %arg2: memref<8x64xf32, #tpu.memory_space<vmem>>, %arg3: memref<64x128xbf16, #tpu.memory_space<vmem>>, %arg4: memref<1x128xf32, #tpu.memory_space<vmem>>, %arg5: memref<128x128xbf16, #tpu.memory_space<vmem>>, %arg6: memref<1x128xf32, #tpu.memory_space<vmem>>, %arg7: memref<8x128xf32, #tpu.memory_space<vmem>>, %arg8: memref<8x128xf32, #tpu.memory_space<vmem>>) attributes {dimension_semantics = [#tpu.dimension_semantics<parallel>, #tpu.dimension_semantics<arbitrary>], iteration_bounds = array<i64: 2, 2>, scalar_prefetch = 0 : i64, scratch_operands = 1 : i64, tpu.core_type = #tpu.core_type<tc>, window_params = [{pipeline_mode = #tpu.pipeline_mode<synchronous>, transform_indices = @transform_0, window_bounds = array<i64: 8, 64>}, {transform_indices = @transform_1, window_bounds = array<i64: 64, 128>}, {transform_indices = @transform_2, window_bounds = array<i64: 1, 128>}, {transform_indices = @transform_3, window_bounds = array<i64: 128, 128>}, {transform_indices = @transform_4, window_bounds = array<i64: 1, 128>}, {transform_indices = @transform_5, window_bounds = array<i64: 8, 128>}]} {
    %c0_i32 = arith.constant 0 : i32
    %0 = arith.cmpi eq, %arg1, %c0_i32 : i32
    %1 = arith.extui %0 : i1 to i32
    %c0_i32_0 = arith.constant 0 : i32
    %2 = arith.cmpi ne, %1, %c0_i32_0 : i32
    scf.if %2 {
      %cst_17 = arith.constant 0.000000e+00 : f32
      %27 = vector.broadcast %cst_17 : f32 to vector<8x128xf32>
      %c0_18 = arith.constant 0 : index
      %c0_19 = arith.constant 0 : index
      %28 = vector.load %arg8[%c0_18, %c0_19] : memref<8x128xf32, #tpu.memory_space<vmem>>, vector<8x128xf32>
      tpu.vector_store %arg8[%c0_18, %c0_19], %27 {strides = array<i32>} : memref<8x128xf32, #tpu.memory_space<vmem>>, vector<8x128xf32>,
    } else {
    }
    %c0 = arith.constant 0 : index
    %c0_1 = arith.constant 0 : index
    %3 = vector.load %arg2[%c0, %c0_1] : memref<8x64xf32, #tpu.memory_space<vmem>>, vector<8x64xf32>
    %4 = arith.truncf %3 : vector<8x64xf32> to vector<8x64xbf16>
    %c0_2 = arith.constant 0 : index
    %c0_3 = arith.constant 0 : index
    %5 = vector.load %arg3[%c0_2, %c0_3] : memref<64x128xbf16, #tpu.memory_space<vmem>>, vector<64x128xbf16>
    %cst = arith.constant dense<0.000000e+00> : vector<8x128xf32>
    %6 = tpu.matmul %4, %5, %cst {dimension_numbers = #tpu.dot_dimension_numbers<[1], [0], [0], [1], [0, 0, 1, 1], [], []>} : vector<8x64xbf16>, vector<64x128xbf16>, vector<8x128xf32> -> vector<8x128xf32>
    %c0_4 = arith.constant 0 : index
    %c0_5 = arith.constant 0 : index
    %7 = vector.load %arg4[%c0_4, %c0_5] : memref<1x128xf32, #tpu.memory_space<vmem>>, vector<1x128xf32>
    %8 = vector.broadcast %7 : vector<1x128xf32> to vector<8x128xf32>
    %9 = arith.addf %6, %8 : vector<8x128xf32>
    %cst_6 = arith.constant 5.000000e-01 : f32
    %10 = vector.broadcast %cst_6 : f32 to vector<8x128xf32>
    %11 = arith.mulf %10, %9 : vector<8x128xf32>
    %cst_7 = arith.constant 0.707106769 : f32
    %12 = vector.broadcast %cst_7 : f32 to vector<8x128xf32>
    %13 = arith.mulf %9, %12 : vector<8x128xf32>
    %14 = math.erf %13 : vector<8x128xf32>
    %cst_8 = arith.constant 1.000000e+00 : f32
    %15 = vector.broadcast %cst_8 : f32 to vector<8x128xf32>
    %16 = arith.addf %15, %14 : vector<8x128xf32>
    %17 = arith.mulf %11, %16 : vector<8x128xf32>
    %c0_9 = arith.constant 0 : index
    %c0_10 = arith.constant 0 : index
    %18 = vector.load %arg8[%c0_9, %c0_10] : memref<8x128xf32, #tpu.memory_space<vmem>>, vector<8x128xf32>
    %19 = arith.truncf %17 : vector<8x128xf32> to vector<8x128xbf16>
    %c0_11 = arith.constant 0 : index
    %c0_12 = arith.constant 0 : index
    %20 = vector.load %arg5[%c0_11, %c0_12] : memref<128x128xbf16, #tpu.memory_space<vmem>>, vector<128x128xbf16>
    %cst_13 = arith.constant dense<0.000000e+00> : vector<8x128xf32>
    %21 = tpu.matmul %19, %20, %cst_13 {dimension_numbers = #tpu.dot_dimension_numbers<[1], [0], [0], [1], [0, 0, 1, 1], [], []>} : vector<8x128xbf16>, vector<128x128xbf16>, vector<8x128xf32> -> vector<8x128xf32>
    %22 = arith.addf %18, %21 : vector<8x128xf32>
    %c0_14 = arith.constant 0 : index
    %c0_15 = arith.constant 0 : index
    %23 = vector.load %arg8[%c0_14, %c0_15] : memref<8x128xf32, #tpu.memory_space<vmem>>, vector<8x128xf32>
    tpu.vector_store %arg8[%c0_14, %c0_15], %22 {strides = array<i32>} : memref<8x128xf32, #tpu.memory_space<vmem>>, vector<8x128xf32>,
    %c1_i32 = arith.constant 1 : i32
    %24 = arith.cmpi eq, %arg1, %c1_i32 : i32
    %25 = arith.extui %24 : i1 to i32
    %c0_i32_16 = arith.constant 0 : i32
    %26 = arith.cmpi ne, %25, %c0_i32_16 : i32
    scf.if %26 {
      %c0_17 = arith.constant 0 : index
      %c0_18 = arith.constant 0 : index
      %27 = vector.load %arg8[%c0_17, %c0_18] : memref<8x128xf32, #tpu.memory_space<vmem>>, vector<8x128xf32>
      %c0_19 = arith.constant 0 : index
      %c0_20 = arith.constant 0 : index
      %28 = vector.load %arg6[%c0_19, %c0_20] : memref<1x128xf32, #tpu.memory_space<vmem>>, vector<1x128xf32>
      %29 = vector.broadcast %28 : vector<1x128xf32> to vector<8x128xf32>
      %30 = arith.addf %27, %29 : vector<8x128xf32>
      %c0_21 = arith.constant 0 : index
      %c0_22 = arith.constant 0 : index
      %31 = vector.load %arg7[%c0_21, %c0_22] : memref<8x128xf32, #tpu.memory_space<vmem>>, vector<8x128xf32>
      tpu.vector_store %arg7[%c0_21, %c0_22], %30 {strides = array<i32>} : memref<8x128xf32, #tpu.memory_space<vmem>>, vector<8x128xf32>,
    } else {
    }
    return
  }
  func.func @transform_0(%arg0: i32, %arg1: i32) -> (i32, i32) {
    %c0_i32 = arith.constant 0 : i32
    %c0_i32_0 = arith.constant 0 : i32
    %c0_i32_1 = arith.constant 0 : i32
    return %c0_i32, %c0_i32_0 : i32, i32
  }
  func.func @transform_1(%arg0: i32, %arg1: i32) -> (i32, i32) {
    %c0_i32 = arith.constant 0 : i32
    %c0_i32_0 = arith.constant 0 : i32
    return %c0_i32, %arg1 : i32, i32
  }
  func.func @transform_2(%arg0: i32, %arg1: i32) -> (i32, i32) {
    %c0_i32 = arith.constant 0 : i32
    %c0_i32_0 = arith.constant 0 : i32
    return %c0_i32, %arg1 : i32, i32
  }
  func.func @transform_3(%arg0: i32, %arg1: i32) -> (i32, i32) {
    %c0_i32 = arith.constant 0 : i32
    return %arg1, %arg0 : i32, i32
  }
  func.func @transform_4(%arg0: i32, %arg1: i32) -> (i32, i32) {
    %c0_i32 = arith.constant 0 : i32
    %c0_i32_0 = arith.constant 0 : i32
    return %c0_i32, %arg0 : i32, i32
  }
  func.func @transform_5(%arg0: i32, %arg1: i32) -> (i32, i32) {
    %c0_i32 = arith.constant 0 : i32
    %c0_i32_0 = arith.constant 0 : i32
    return %c0_i32, %arg0 : i32, i32
  }
}

</mosaic_0001>

<bundles_post_ra>
// kernel: tpu_custom_call.1
= control target key start
LH: loop header
LB: loop body
LE: loop exit
PB: predicated region body
PF: predicated region fallthrough
CT: control target
= control target key end

     0   :  { %s1657_s0 = inlined_call_operand.hbm [shape: f32[8,64], index: 0, kind: input, shape index: {}]   ;;  %s1658_s1 = inlined_call_operand.hbm [shape: bf16[64,256], index: 1, kind: input, shape index: {}]   ;;  %s1659_s2 = inlined_call_operand.vmem [shape: f32[1,256], index: 2, kind: input, shape index: {}]   ;;  %s1660_s3 = inlined_call_operand.hbm [shape: bf16[256,256], index: 3, kind: input, shape index: {}]   ;;  %s1661_s4 = inlined_call_operand.vmem [shape: f32[1,256], index: 4, kind: input, shape index: {}]   ;;  %s1662_s5 = inlined_call_operand.hbm [shape: f32[8,256], index: 5, kind: output, shape index: {}]  }
   0x1   :  { %1681 = sst [smem:[#allocation23_spill]] %s1658_s1 }
   0x2   :  { %1682 = sst [smem:[#allocation24_spill]] %s1659_s2 }
   0x3   :  { %1683 = sst [smem:[#allocation25_spill]] %s1661_s4 }
   0x4   :  { %1684 = sst [smem:[#allocation26_spill]] %s1662_s5 }
   0x5   :  { %10 = vsyncpa [#allocation4], 0 }
   0x6   :  { %11 = vsyncpa [#allocation7], 0 }
   0x7   :  { %13 = vsyncpa [#allocation7 + $0x1], 0 }
   0x8   :  { %14 = vsyncpa [#allocation5], 0 }
   0x9   :  { %16 = vsyncpa [#allocation5 + $0x1], 0  ;;  %s1232_s18 = smov 0   ;;  %s1234_s19 = smov 0  }
   0xa   :  { %s1236_s20 = smov 0   ;;  %s1238_s21 = smov 0  }
   0xb   :  { %s1240_s22 = smov 0   ;;  %s1242_s23 = smov 0  }
   0xc   :  { %s1244_s24 = smov 0   ;;  %s1246_s25 = smov 0  }
   0xd   :  { %s1248_s26 = smov 0   ;;  %s1250_s27 = smov 0  }
   0xe   :  { %s1252_s28 = smov 0   ;;  %s1254_s29 = smov 0  }
   0xf   :  { %s1256_s30 = smov 0   ;;  %s1258_s6 = smov 0  }
  0x10 LB: > { %1685 = sst [smem:[#allocation14_spill]] %s1146_s20  ;;  %s31_s7 = sadd.s32 1, %s1182_s29  ;;  %s1190_s6 = sphi %s1258_s6, %s22_s6   ;;  %s1186_s30 = sphi %s1256_s30, %s1746_s30   ;;  %s1182_s29 = sphi %s1254_s29, %s1745_s29   ;;  %s1178_s28 = sphi %s1252_s28, %s1744_s28   ;;  %s1174_s27 = sphi %s1250_s27, %s1743_s27   ;;  %s1170_s26 = sphi %s1248_s26, %s1742_s26   ;;  %s1166_s25 = sphi %s1246_s25, %s1741_s25   ;;  %s1162_s24 = sphi %s1244_s24, %s1740_s24   ;;  %s1158_s23 = sphi %s1242_s23, %s1730_s23   ;;  %s1154_s22 = sphi %s1240_s22, %s1739_s22   ;;  %s1150_s21 = sphi %s1238_s21, %s1738_s21   ;;  %s1146_s20 = sphi %s1236_s20, %s1728_s20   ;;  %s1142_s19 = sphi %s1234_s19, %s1737_s19   ;;  %s1138_s18 = sphi %s1232_s18, %s1736_s18  }
  0x11   : > { %1686 = sst [smem:[#allocation15_spill]] %s1158_s23  ;;  %s62_s8 = sadd.s32 1, %s1170_s26 }
  0x12   : > { %1687 = sst [smem:[#allocation16_spill]] %s1170_s26  ;;  %p1304_p0 = scmp.ge.s32.totalorder %s31_s7, 2 }
  0x13   : > { %p69_p1 = scmp.ne.s32.totalorder %s1170_s26, %s1166_s25  ;;  %p1667_p2 = scmp.eq.s32.totalorder %s1190_s6, 0 }
  0x14   : > { %s1748_s7 = smov (%p1304_p0, %s31_s7), 0  ;;  %p1666_p4 = scmp.lt.s32.totalorder %s1190_s6, 4 }
  0x15   : > { %1689 = sst [smem:[#allocation17_spill]] %s1748_s7  ;;  %p71_p3 = por %p1667_p2, %p69_p1 }
  0x16   : > { %s1320_s10 = ssub.s32 %s1182_s29, %s1748_s7  ;;  %s216_s11 = sand.u32 1, %s1190_s6  }
  0x17   : > { %p60_p5 = scmp.eq.s32.totalorder %s1320_s10, 0  ;;  %s218_s12 = sand.u32 1, %s1170_s26  }
  0x18   : > { %s708_s13 = sshll.u32 %s1182_s29, 6  ;;  %s707_s15 = sshll.u32 %s218_s12, 5 }
  0x19   : > { %s1327_s14 = scalar_select %p60_p5, %s1170_s26, %s62_s8  }
  0x1a   : > { %s1691_s1 = sld [smem:[#allocation23_spill]]  ;;  %p1336_p6 = pnand %p1666_p4, %p71_p3 }
  0x1b   : > { %1690 = sst [smem:[#allocation18_spill]] %s1327_s14  ;;  %s220_s4 = scalar_lea.vmem [#allocation6], %s707_s15 }
  0x1c   : > { %s226_s8 = sshll.u32 %s220_s4, 4  ;;  %s1342_s12 = scalar_lea.sflag [#allocation7], %s216_s11  ;;  %s1340_s8 = int_to_ptr.vmem [resolvable:$true] %s226_s8 }
  0x1d   : > { %p950_p8 = pneg %p1336_p6 }
  0x20   : > { %s1332_s5 = scalar_lea.hbm %s1691_s1, %s708_s13  ;;  %s953_s14 = scalar_lea.hbm %s1691_s1, 1024 }
  0x21   : > { %s948_s16 = scalar_lea.hbm %s1332_s5, 512  ;;  %p954_p11 = scmp.lt.u32.totalorder %s1332_s5, %s1691_s1 }
  0x22   : > { %p949_p7 = scmp.ne.s32.totalorder %s1332_s5, %s948_s16  ;;  %p955_p12 = scmp.lt.u32.totalorder %s953_s14, %s948_s16 }
  0x23   : > { %p957_p1 = scmp.lt.u32.totalorder %s948_s16, %s1332_s5 }
  0x24   : > { %p951_p9 = pnand %p950_p8, %p949_p7  ;;  %p956_p13 = por %p955_p12, %p954_p11 }
  0x26   : > { %p952_p10 = pneg %p951_p9  ;;  %p958_p3 = por %p957_p1, %p956_p13 }
  0x28   : > { %p959_p5 = pnand %p958_p3, %p952_p10 }
  0x2a   : > { %962 = shalt.err (!%p959_p5)
}
  0x2b   : > { %s963_s4 = scalar_lea.vmem %s1340_s8, 512  ;;  %s1192_s11 = smov [#allocation6]  }
  0x2c   : > { %p964_p7 = scmp.ne.s32.totalorder %s1340_s8, %s963_s4  ;;  %s968_s15 = sshll.u32 %s1192_s11, 4  ;;  %s969_s15 = int_to_ptr.vmem [resolvable:$false] %s968_s15 }
  0x2d   : > { %s970_s2 = scalar_lea.vmem %s969_s15, 1024  ;;  %p971_p2 = scmp.lt.s32.totalorder %s1340_s8, %s969_s15 }
  0x2e   : > { %p966_p9 = pnand %p964_p7, %p950_p8  ;;  %p972_p11 = scmp.lt.s32.totalorder %s970_s2, %s963_s4 }
  0x30   : > { %p967_p4 = pneg %p966_p9  ;;  %p973_p12 = por %p972_p11, %p971_p2 }
  0x32   : > { %p974_p13 = pnand %p973_p12, %p967_p4 }
  0x34   : > { %977 = shalt.err (!%p974_p13)
}
  0x35   : > { %s1668_s26 = smov 128   ;;  %s1670_s14 = smov 64  }
  0x36   : > { %s1671_s16 = smov 4   ;;  %s1374_s13 = sadd.s32 4294967295, %s1190_s6  }
  0x37   : > { %803 = dma.hbm_to_vmem [thread:$0]  (!%p1336_p6), %s1332_s5, 512, %s1340_s8, %s1342_s12, %s1668_s26, %s1670_s14, %s1671_s16  }
  0x38   : > { %s703_s17 = sadd.s32 4294967294, %s1190_s6   ;;  %s34_s4 = sadd.s32 1, %s1186_s30 }
  0x39   : > { %p75_p2 = scmp.ne.s32.totalorder %s1166_s25, %s1162_s24  ;;  %s1750_s4 = smov (!%p1304_p0, %s34_s4), %s1186_s30 }
  0x3a   : > { %p1669_p4 = scmp.eq.s32.totalorder %s1374_s13, 0  ;;  %s116_s7 = sadd.s32 1, %s1158_s23 }
  0x3b   : > { %p36_p6 = scmp.ge.s32.totalorder %s1750_s4, 2  ;;  %p123_p8 = scmp.ne.s32.totalorder %s1158_s23, %s1154_s22 }
  0x3c   : > { %p1389_p10 = por %p1669_p4, %p75_p2  ;;  %p129_p1 = scmp.ne.s32.totalorder %s1154_s22, %s1150_s21 }
  0x3d   : > { %s1752_s4 = smov (%p36_p6, %s1750_s4), 0  ;;  %p1695_p3 = scmp.eq.s32.totalorder %s1190_s6, 0 }
  0x3e   : > { %s1693_s5 = scalar_select %p1389_p10, 1, 0 }
  0x3f   : > { %1694 = sst [smem:[#allocation19_spill]] %s1752_s4  ;;  %p1399_p0 = por %p123_p8, %p1695_p3 }
  0x40   : > { %p1405_p5 = por %p129_p1, %p1669_p4  ;;  %s112_s8 = ssub.s32 %s1186_s30, %s1752_s4 }
  0x41   : > { %s168_s11 = sadd.s32 1, %s1146_s20  ;;  %s113_s15 = sor.u32 %s112_s8, %s1320_s10 }
  0x42   : > { %s1697_s9 = scalar_select %p1405_p5, 1, 0 }
  0x43   : > { %p166_p7 = scmp.eq.s32.totalorder %s112_s8, 0  ;;  %p114_p9 = scmp.eq.s32.totalorder %s113_s15, 0 }
  0x44   : > { %p178_p11 = scmp.ne.s32.totalorder %s1146_s20, %s1142_s19  ;;  %p179_p12 = scmp.eq.s32.totalorder %s1374_s13, 3 }
  0x45   : > { %s1416_s21 = scalar_select %p166_p7, %s1146_s20, %s168_s11  }
  0x46   : > { %s1419_s2 = scalar_select %p114_p9, %s1158_s23, %s116_s7  }
  0x47   : > { %1698 = sst [smem:[#allocation20_spill]] %s1416_s21  ;;  %p184_p13 = scmp.ne.s32.totalorder %s1142_s19, %s1138_s18 }
  0x48   : > { %1699 = sst [smem:[#allocation21_spill]] %s1419_s2  ;;  %p185_p2 = scmp.eq.s32.totalorder %s703_s17, 3 }
  0x49   : > { %p704_p6 = scmp.ge.s32.totalorder %s1190_s6, 1  ;;  %p1425_p8 = por %p179_p12, %p178_p11 }
  0x4a   : > { %p192_p1 = scmp.lt.s32.totalorder %s1190_s6, 5  ;;  %p1430_p3 = por %p185_p2, %p184_p13 }
  0x4b   : > { %s1700_s26 = scalar_select %p1425_p8, 1, 0 }
  0x4c   : > { %s1701_s10 = scalar_select %p1430_p3, 1, 0 }
  0x4d   : > { %p1434_p7 = pnand %p704_p6, %p192_p1  ;;  %s1196_s7 = smov [#allocation3]  }
  0x4e   : > { %1702 = sst [smem:[#allocation22_spill]] %s1701_s10  ;;  %s205_s11 = sshll.u32 %s1196_s7, 4  ;;  %s206_s11 = int_to_ptr.vmem [resolvable:$true] %s205_s11 }
  0x4f   : > { %s1703_s8 = scalar_select %p1434_p7, 1, 0 }
  0x50   : > { %p1704_p9 = scmp.lt.s32.totalorder %s1190_s6, 4  ;;  %p796_p11 = pneg %p1434_p7 }
  0x51   : > { %s244_s15 = sand.u32 1, %s1158_s23   ;;  %p1706_p12 = scmp.eq.s32.totalorder %s1374_s13, 0 }
  0x52   : > { %p1442_p4 = pnand %p1704_p9, %p1399_p0  ;;  %s709_s16 = sshll.u32 %s244_s15, 6 }
  0x53   : > { %p1451_p13 = pnand %p796_p11, %p1706_p12  ;;  %s739_s1 = sshll.u32 %s1182_s29, 5 }
  0x54   : > { %s1705_s17 = scalar_select %p1442_p4, 1, 0 }
  0x55   : > { %s252_s4 = sadd.s32 %s1186_s30, %s739_s1  ;;  %s978_s2 = scalar_lea.hbm %s1657_s0, 128 }
  0x56   : > { %p979_p0 = scmp.ne.s32.totalorder %s1657_s0, %s978_s2  ;;  %p980_p2 = pneg %p1451_p13 }
  0x57   : > { %p985_p9 = scmp.lt.u32.totalorder %s978_s2, %s1657_s0 }
  0x58   : > { %p981_p6 = pnand %p980_p2, %p979_p0 }
  0x5a   : > { %p982_p1 = pneg %p981_p6 }
  0x5c   : > { %p987_p11 = pnand %p985_p9, %p982_p1 }
  0x5e   : > { %990 = shalt.err (!%p987_p11)
}
  0x5f   : > { %s991_s15 = scalar_lea.vmem %s206_s11, 128  ;;  %p999_p5 = scmp.lt.s32.totalorder %s206_s11, %s206_s11 }
  0x60   : > { %p992_p12 = scmp.ne.s32.totalorder %s206_s11, %s991_s15  ;;  %p1000_p10 = scmp.lt.s32.totalorder %s991_s15, %s991_s15 }
  0x62   : > { %p994_p3 = pnand %p992_p12, %p980_p2  ;;  %p1001_p7 = por %p1000_p10, %p999_p5 }
  0x64   : > { %p995_p8 = pneg %p994_p3 }
  0x66   : > { %p1002_p4 = pnand %p1001_p7, %p995_p8 }
  0x68   : > { %1005 = shalt.err (!%p1002_p4)
}
  0x69   : > { %799 = dma.hbm_to_vmem [thread:$0]  (!%p1451_p13), %s1657_s0, 128, %s206_s11, [#allocation4]  }
  0x6a   : > { %s712_s23 = sshll.u32 %s252_s4, 6  ;;  %s246_s21 = scalar_lea.vmem [#allocation8], %s709_s16 }
  0x6b   : > { %s255_s2 = sshll.u32 %s246_s21, 4  ;;  %s1476_s24 = scalar_lea.hbm %s1660_s3, %s712_s23  ;;  %s1478_s2 = int_to_ptr.vmem [resolvable:$true] %s255_s2 }
  0x6c   : > { %s1006_s14 = scalar_lea.hbm %s1476_s24, 1024  ;;  %p1708_p10 = scmp.ne.s32.totalorder %s1705_s17, 0 }
  0x6d   : > { %p1007_p4 = scmp.ne.s32.totalorder %s1476_s24, %s1006_s14  ;;  %s1011_s11 = scalar_lea.hbm %s1660_s3, 4096 }
  0x6e   : > { %p1008_p5 = pneg %p1708_p10  ;;  %p1012_p7 = scmp.lt.u32.totalorder %s1476_s24, %s1660_s3 }
  0x6f   : > { %p1013_p13 = scmp.lt.u32.totalorder %s1011_s11, %s1006_s14  ;;  %p1015_p2 = scmp.lt.u32.totalorder %s1006_s14, %s1476_s24 }
  0x70   : > { %p1009_p8 = pnand %p1008_p5, %p1007_p4 }
  0x71   : > { %p1014_p0 = por %p1013_p13, %p1012_p7 }
  0x72   : > { %p1010_p3 = pneg %p1009_p8 }
  0x73   : > { %p1016_p6 = por %p1015_p2, %p1014_p0 }
  0x75   : > { %p1017_p1 = pnand %p1016_p6, %p1010_p3 }
  0x77   : > { %1020 = shalt.err (!%p1017_p1)
}
  0x78   : > { %s1021_s20 = scalar_lea.vmem %s1478_s2, 1024  ;;  %s1197_s23 = smov [#allocation8]  }
  0x79   : > { %p1022_p9 = scmp.ne.s32.totalorder %s1478_s2, %s1021_s20  ;;  %s1026_s21 = sshll.u32 %s1197_s23, 4  ;;  %s1027_s21 = int_to_ptr.vmem [resolvable:$false] %s1026_s21 }
  0x7a   : > { %s1028_s10 = scalar_lea.vmem %s1027_s21, 2048  ;;  %p1029_p4 = scmp.lt.s32.totalorder %s1478_s2, %s1027_s21 }
  0x7b   : > { %p1024_p11 = pnand %p1022_p9, %p1008_p5  ;;  %p1030_p8 = scmp.lt.s32.totalorder %s1028_s10, %s1021_s20 }
  0x7d   : > { %p1025_p12 = pneg %p1024_p11  ;;  %p1031_p7 = por %p1030_p8, %p1029_p4 }
  0x7f   : > { %p1032_p13 = pnand %p1031_p7, %p1025_p12 }
  0x81   : > { %1035 = shalt.err (!%p1032_p13)
}
  0x82   : > { %s1709_s7 = smov 4   ;;  %s1710_s14 = smov 64  }
  0x83   : > { %s1711_s16 = smov 128   ;;  %p1712_p5 = scmp.ne.s32.totalorder %s1703_s8, 0 }
  0x84   : > { %806 = dma.hbm_to_vmem [thread:$0]  (!%p1708_p10), %s1476_s24, 1024, %s1478_s2, %s1342_s12, %s1711_s16, %s1710_s14, %s1709_s7  }
  0x85   : > { %273 = sbr.rel (%p1712_p5) target bundleno = 666 (0x29a), region = 40  ;;  %p1713_p3 = scmp.eq.s32.totalorder (!%p1712_p5), %s1374_s13, 0 }
  0x8c   : > { %1121 = dma.done.wait (%p1713_p3), [#allocation4], 128   ;;  %p1714_p0 = pmov %p1713_p3 }
  0x8d   : > { %s279_s17 = sand.u32 1, %s1374_s13   ;;  %s281_s4 = sand.u32 1, %s1166_s25  }
  0x8e   : > { %1123 = vsyncadd (%p1714_p0), [#allocation4], 4294967168  ;;  %s715_s11 = sshll.u32 %s281_s4, 5  ;;  %s280_s15 = scalar_lea.sflag [#allocation7], %s279_s17 }
  0x8f   : > { %s1517_s1 = scalar_lea.vmem [#allocation6], %s715_s11  ;;  %p1715_p2 = scmp.ne.s32.totalorder %s1693_s5, 0 }
  0x91   : > { %1125 = dma.done.wait (%p1715_p2), %s280_s15, 512  }
  0x92   : > { %1127 = vsyncadd (%p1715_p2), %s280_s15, 4294966784  ;;  %s290_s12 = sand.u32 1, %s1154_s22   ;;  %p1716_p10 = scmp.ne.s32.totalorder %s1697_s9, 0 }
  0x93   : > { %s716_s8 = sshll.u32 %s290_s12, 6 }
  0x94   : > { %s1524_s2 = scalar_lea.vmem [#allocation8], %s716_s8 }
  0x95   : > { %1129 = dma.done.wait (%p1716_p10), %s280_s15, 1024  }
  0x96   : > { %1131 = vsyncadd (%p1716_p10), %s280_s15, 4294966272  ;;  %s327_s13 = sand.u32 1, %s1142_s19   ;;  %p330_p6 = scmp.lt.s32.totalorder %s1174_s27, 1 }
  0x97   : > { %s1534_s5 = sshll.u32 %s327_s13, 3  ;;  %p334_p1 = scmp.lt.s32.totalorder %s1178_s28, 1 }
  0x98   : > { %s1538_s24 = scalar_select %p330_p6, %s1174_s27, 1 }
  0x99   : > { %s1541_s20 = scalar_select %p334_p1, %s1178_s28, 1 }
  0x9a   : > { %s1717_s21 = sld [smem:[#allocation24_spill]]  ;;  %s1718_s16 = sld [smem:[#allocation25_spill]] }
  0x9b   : > { %s329_s4 = scalar_lea.vmem [#allocation9], %s1534_s5  ;;  %p718_p9 = scmp.ne.s32.totalorder %s1174_s27, 0 }
  0x9c   : > { %v1198_v0 = vmov (!%p718_p9), 0.0  }
  0x9d   : > { %341 = sbr.rel (%p718_p9) target bundleno = 164 (0xa4), region = 56  ;;  %342 = vst [vmem:[#allocation2] sm:$0xff] (!%p718_p9), %v1198_v0 }
  0xa0   : > { %s332_s10 = scalar_lea.vmem %s1717_s21, %s1538_s24  ;;  %s336_s17 = scalar_lea.vmem %s1718_s16, %s1541_s20 }
  0xa4 PF: > { %v934_v1 = vld [vmem:[%s1517_s1] sm:$0xff]   ;;  %v1199_v2 = vmov 0.0   ;;  %v935_v3 = vld [vmem:[%s1517_s1 + $0x8] sm:$0xff]   ;;  %vm1200_vm0 = vmmov 0   ;;  %v936_v5 = vld [vmem:[%s1517_s1 + $0x10] sm:$0xff]   ;;  %vm384_vm1 = vcmask 523264  }
  0xa5   : > { %754 = vmatprep.subr.bf16.mxu0 %v1199_v2  ;;  %766 = vmatprep.subr.bf16.mxu1 %v1199_v2  ;;  %v938_v4 = vld [vmem:[%s1524_s2] sm:$0xff]   ;;  %v939_v6 = vld [vmem:[%s1524_s2 + $0x8] sm:$0xff]   ;;  %v937_v7 = vld [vmem:[%s1517_s1 + $0x18] sm:$0xff]   ;;  %p733_p11 = scmp.ne.s32.totalorder %s1174_s27, 1 }
  0xa6   : > { %755 = vmatpush3.bf16.msra.mxu0 %v934_v1  ;;  %762 = vmatprep.mubr.msk.bf16.mxu0 %vm1200_vm0, %v1199_v2  ;;  %v343_v8 = vld [vmem:[#allocation3] sm:$0xff]  ;;  %v940_v9 = vld [vmem:[%s1524_s2 + $0x10] sm:$0xff]   ;;  %v942_v12 = vld [vmem:[%s1524_s2 + $0x20] sm:$0xff]  }
  0xa7   : > { %756 = vmatprep.subr.bf16.mxu0 %v1199_v2  ;;  %782 = vmatprep.mubr.msk.bf16.mxu1 %vm1200_vm0, %v1199_v2  ;;  %v344_v10 = vpack.c.bf16 %v343_v8, %v343_v8  ;;  %v941_v11 = vld [vmem:[%s1524_s2 + $0x18] sm:$0xff]   ;;  %v943_v13 = vld [vmem:[%s1524_s2 + $0x28] sm:$0xff]   ;;  %v944_v14 = vld [vmem:[%s1524_s2 + $0x30] sm:$0xff]  }
  0xa8   : > { %767 = vmatpush3.bf16.msra.mxu1 %v938_v4  ;;  %v945_v15 = vld [vmem:[%s1524_s2 + $0x38] sm:$0xff]   ;;  %v719_v16 = vld [vmem:[%s332_s10] ss:$0 sm:$0xff] }
  0xa9   : > { %768 = vmatprep.subr.bf16.mxu1 %v1199_v2  ;;  %v433_v28 = vld [vmem:[#allocation2] sm:$0xff] }
  0xaa   : > { %757 = vmatpush3.bf16.msra.mxu0 %v935_v3  ;;  %v734_v35 = vld [vmem:[%s336_s17] ss:$0 sm:$0xff] (!%p733_p11) }
  0xab   : > { %758 = vmatprep.subr.bf16.mxu0 %v1199_v2 }
  0xac   : > { %769 = vmatpush3.bf16.msra.mxu1 %v939_v6 }
  0xad   : > { %770 = vmatprep.subr.bf16.mxu1 %v1199_v2 }
  0xae   : > { %759 = vmatpush3.bf16.msra.mxu0 %v936_v5 }
  0xaf   : > { %760 = vmatprep.subr.bf16.mxu0 %v1199_v2 }
  0xb0   : > { %771 = vmatpush3.bf16.msra.mxu1 %v940_v9 }
  0xb1   : > { %772 = vmatprep.subr.bf16.mxu1 %v1199_v2 }
  0xb2   : > { %761 = vmatpush3.bf16.msra.mxu0 %v937_v7 }
  0xb4   : > { %773 = vmatpush3.bf16.msra.mxu1 %v941_v11 }
  0xb5   : > { %763 = vmatmul.mubr.msk.bf16.vlgmr.msra.gmra.mrb[0].mxu0 %vm384_vm1, %v344_v10  ;;  %774 = vmatprep.subr.bf16.mxu1 %v1199_v2 }
  0xb8   : > { %775 = vmatpush3.bf16.msra.mxu1 %v942_v12 }
  0xb9   : > { %776 = vmatprep.subr.bf16.mxu1 %v1199_v2 }
  0xbc   : > { %777 = vmatpush3.bf16.msra.mxu1 %v943_v13 }
  0xbd   : > { %778 = vmatprep.subr.bf16.mxu1 %v1199_v2 }
  0xc0   : > { %779 = vmatpush3.bf16.msra.mxu1 %v944_v14 }
  0xc1   : > { %780 = vmatprep.subr.bf16.mxu1 %v1199_v2 }
  0xc4   : > { %781 = vmatpush3.bf16.msra.mxu1 %v945_v15 }
 0x188   : > { %v422_v17 = vpop.f32.mrb[0].mxu0 }
 0x189   : > { %v423_v18 = vadd.f32 %v719_v16, %v422_v17  ;;  %v764_v19 = vpop.f32.mrb[1].mxu0 }
 0x18a   : > { %v425_v20 = vpop.f32.mrb[2].mxu0 }
 0x18b   : > { %v429_v21 = vmul.f32 0.70710677, %v423_v18  ;;  %v765_v22 = vpop.f32.mrb[3].mxu0  ;;  %v428_v24 = vmul.f32 0.5, %v423_v18 }
 0x18d   : > { %946 = verf.f32 %v429_v21 }
 0x197   : > { %v947_v23 = vpop.eup %946 }
 0x198   : > { %v431_v25 = vadd.f32 1.0, %v947_v23 }
 0x19a   : > { %v432_v26 = vmul.f32 %v431_v25, %v428_v24 }
 0x19c   : > { %v434_v27 = vpack.c.bf16 %v432_v26, %v432_v26 }
 0x19e   : > { %783 = vmatmul.mubr.bf16.vlgmr.msra.gmra.mrb[0].mxu1 %v434_v27 }
 0x26e   : > { %544 = sbr.rel (%p733_p11) target bundleno = 639 (0x27f), region = 60 }
 0x271   : > { %v533_v29 = vpop.f32.mrb[0].mxu1 }
 0x272   : > { %v539_v30 = vadd.f32 %v533_v29, %v433_v28  ;;  %v784_v31 = vpop.f32.mrb[1].mxu1 }
 0x273   : > { %v536_v32 = vpop.f32.mrb[2].mxu1 }
 0x274   : > { %540 = vst [vmem:[#allocation2] sm:$0xff] %v539_v30  ;;  %v785_v33 = vpop.f32.mrb[3].mxu1 }
 0x27b   : > { %v545_v34 = vld [vmem:[#allocation2] sm:$0xff] }
 0x27c   : > { %v553_v36 = vadd.f32 %v734_v35, %v545_v34 }
 0x27e   : > { %554 = vst [vmem:[%s329_s4] sm:$0xff] %v553_v36 }
 0x27f PF: > { %s736_s24 = sshll.u32 %s1178_s28, 7  ;;  %s1721_s23 = sld [smem:[#allocation26_spill]] }
 0x280   : > { %s569_s7 = sshll.u32 %s329_s4, 4  ;;  %s556_s20 = scalar_lea.sflag [#allocation5], %s327_s13  ;;  %s570_s7 = int_to_ptr.vmem [resolvable:$true] %s569_s7 }
 0x281   : > { %s1036_s14 = scalar_lea.vmem %s570_s7, 128  ;;  %p1723_p4 = scmp.ne.s32.totalorder %s1700_s26, 0 }
 0x282   : > { %p1037_p12 = scmp.ne.s32.totalorder %s570_s7, %s1036_s14  ;;  %s1201_s16 = smov [#allocation9]  }
 0x283   : > { %s1040_s17 = sshll.u32 %s1201_s16, 4  ;;  %s1041_s17 = int_to_ptr.vmem [resolvable:$false] %s1040_s17 }
 0x284   : > { %p1038_p8 = pnand %p1037_p12, %p1723_p4  ;;  %s1042_s11 = scalar_lea.vmem %s1041_s17, 256 }
 0x285   : > { %s1722_s10 = smov %s1721_s23  ;;  %s1582_s21 = scalar_lea.hbm %s1721_s23, %s736_s24 }
 0x286   : > { %p1039_p7 = pneg %p1038_p8  ;;  %p1043_p13 = scmp.lt.s32.totalorder %s570_s7, %s1041_s17 }
 0x287   : > { %p1044_p5 = scmp.lt.s32.totalorder %s1042_s11, %s1036_s14 }
 0x289   : > { %p1045_p3 = por %p1044_p5, %p1043_p13 }
 0x28b   : > { %p1046_p0 = pnand %p1045_p3, %p1039_p7 }
 0x28d   : > { %1049 = shalt.err (!%p1046_p0)
}
 0x28e   : > { %s1050_s28 = scalar_lea.hbm %s1582_s21, 128  ;;  %s1054_s4 = scalar_lea.hbm %s1722_s10, 256 }
 0x28f   : > { %p1051_p2 = scmp.ne.s32.totalorder %s1582_s21, %s1050_s28  ;;  %p1055_p1 = scmp.lt.u32.totalorder %s1582_s21, %s1722_s10 }
 0x290   : > { %p1056_p9 = scmp.lt.u32.totalorder %s1054_s4, %s1050_s28  ;;  %p1058_p12 = scmp.lt.u32.totalorder %s1050_s28, %s1582_s21 }
 0x291   : > { %p1052_p10 = pnand %p1051_p2, %p1723_p4 }
 0x292   : > { %p1057_p11 = por %p1056_p9, %p1055_p1 }
 0x293   : > { %p1053_p6 = pneg %p1052_p10 }
 0x294   : > { %p1059_p8 = por %p1058_p12, %p1057_p11 }
 0x296   : > { %p1060_p7 = pnand %p1059_p8, %p1053_p6 }
 0x298   : > { %1063 = shalt.err (!%p1060_p7)
}
 0x299   : > { %794 = dma.vmem_to_hbm [thread:$0]  (%p1723_p4), %s570_s7, 128, %s1582_s21, %s556_s20  }
 0x29a PF: > { %s1724_s12 = sld [smem:[#allocation22_spill]]  ;;  %p814_p13 = scmp.ge.s32.totalorder %s1190_s6, 2 }
 0x29b   : > { %s581_s8 = sand.u32 1, %s1138_s18  }
 0x29c   : > { %s582_s2 = scalar_lea.sflag [#allocation5], %s581_s8 }
 0x2a0   : > { %p1725_p5 = scmp.ne.s32.totalorder %s1724_s12, 0 }
 0x2a2   : > { %p808_p3 = pnand %p814_p13, %p1725_p5 }
 0x2a4   : > { %1133 = dma.done.wait (!%p808_p3), %s582_s2, 128  }
 0x2a5   : > { %1135 = vsyncadd (!%p808_p3), %s582_s2, 4294967168  ;;  %s22_s6 = sadd.s32 1, %s1190_s6   ;;  %s1727_s26 = sld [smem:[#allocation14_spill]] }
 0x2a6   : > { %p1610_p0 = scmp.ge.s32.totalorder %s22_s6, 6   ;;  %s1728_s20 = sld [smem:[#allocation20_spill]] }
 0x2a7   : > { %s1729_s9 = sld [smem:[#allocation15_spill]]  ;;  %s1730_s23 = sld [smem:[#allocation21_spill]] }
 0x2a8   : > { %s1731_s27 = sld [smem:[#allocation16_spill]]  ;;  %s1732_s7 = sld [smem:[#allocation18_spill]] }
 0x2a9   : > { %s1733_s14 = sld [smem:[#allocation17_spill]]  ;;  %s1734_s16 = sld [smem:[#allocation19_spill]] }
 0x2aa   : > { %s1736_s18 = smov %s1142_s19  ;;  %s1738_s21 = smov %s1154_s22 }
 0x2ab   : > { %s1737_s19 = smov %s1727_s26  ;;  %s1740_s24 = smov %s1166_s25 }
 0x2ac   : > { %s1744_s28 = smov %s1186_s30  ;;  %21 = sbr.rel (!%p1610_p0) target bundleno = 16 (0x10), region = 115 }
 0x2ad   : > { %s1739_s22 = smov %s1729_s9 }
 0x2ae   : > { %s1741_s25 = smov %s1731_s27  ;;  %s1742_s26 = smov %s1732_s7 }
 0x2af   : > { %s1743_s27 = smov %s1182_s29  ;;  %s1745_s29 = smov %s1733_s14 }
 0x2b0   : > { %s1746_s30 = smov %s1734_s16 }
 0x2b3   :  { %587 = vsyncpa [#allocation4], 1 }
 0x2b4   :  { %589 = vsyncpa [#allocation4 + $0x1], 1 }
 0x2b5   :  { %590 = vsyncpa [#allocation7], 1 }
 0x2b6   :  { %592 = vsyncpa [#allocation7 + $0x1], 1 }
 0x2b7   :  { %593 = vsyncpa [#allocation5], 1 }
 0x2b8   :  { %595 = vsyncpa [#allocation5 + $0x1], 1 }

</bundles_post_ra>
